<compile_context>
chip_gen: v7x
topology: tpu7x:2x2x1
jax: 0.10.0
libtpu: 0.0.40
codegen_flags: <defaults>
</compile_context>

<pallas_src>
import jax
import jax.numpy as jnp
from jax.experimental import pallas as pl
from jax.experimental.pallas import tpu as pltpu


# ---------------------------------------------------------------------------
# Pallas kernel: one batch tile of the residual MLP block
# ---------------------------------------------------------------------------
def resblock_kernel(x_ref, w1_ref, b1_ref, w2_ref, b2_ref, o_ref):
    f32 = jnp.float32
    x = x_ref[...].astype(f32)                       # (tn, L) f32

    # fc = ReLU -> Linear(L, L) -> ReLU -> Linear(L, L); MXU in weight dtype,
    # f32 accumulation, all elementwise work in f32 (v5e has no bf16 VPU).
    h = jnp.maximum(x, 0.0).astype(w1_ref.dtype)
    h = jnp.dot(h, w1_ref[...], preferred_element_type=f32) + b1_ref[...]
    h = jnp.maximum(h, 0.0).astype(w2_ref.dtype)
    h = jnp.dot(h, w2_ref[...], preferred_element_type=f32) + b2_ref[...]

    # Residual connection; lane-dense (tn, L) store.
    o_ref[...] = (x + h).astype(o_ref.dtype)


# ---------------------------------------------------------------------------
# Parameters (deterministic synthetic init; Linear weights stored as (in, out))
# ---------------------------------------------------------------------------
def init_params(key, layer):
    k1, k2, k3, k4 = jax.random.split(key, 4)
    scale = 1.0 / jnp.sqrt(jnp.float32(layer))
    return {
        'w1': (scale * jax.random.normal(k1, (layer, layer))).astype(jnp.float32),
        'b1': (0.01 * jax.random.normal(k2, (1, layer))).astype(jnp.float32),
        'w2': (scale * jax.random.normal(k3, (layer, layer))).astype(jnp.float32),
        'b2': (0.01 * jax.random.normal(k4, (1, layer))).astype(jnp.float32),
    }


def make_kernel_params(params, *, weight_dtype=jnp.bfloat16):
    """One-time cast of the MXU weight operands (hoisted out of the forward).

    Use weight_dtype=jnp.float32 if bit-level parity with the f32 reference is
    required (throughput is unchanged at small L — the kernel is HBM-bound).
    """
    return {
        'w1': params['w1'].astype(weight_dtype),
        'b1': params['b1'].astype(jnp.float32),
        'w2': params['w2'].astype(weight_dtype),
        'b2': params['b2'].astype(jnp.float32),
    }


def _round_up(x, m):
    return ((x + m - 1) // m) * m


def _choose_tile(n, block_n):
    """Pick the batch tile: big enough to hit the HBM roofline, enough steps
    for megacore + pipeline overlap, and always legal w.r.t. (8, 128)."""
    block_n = max(8, _round_up(block_n, 8))
    if n <= block_n:
        return n                      # single full-extent block (always legal)
    tn = block_n
    # With a large batch, cap the tile so the grid has >= ~8 steps (two v7x
    # TCs x several steps of prefetch/writeback), but never below 256 rows.
    if n >= 8 * 256:
        tn = min(tn, max(256, _round_up(pl.cdiv(n, 8), 8)))
    return tn


# ---------------------------------------------------------------------------
# Wrapper: batch-tiled pallas_call with VMEM-resident weights
# ---------------------------------------------------------------------------
def resblock_forward(kparams, x, *, block_n=512, out_dtype=None):
    N, L = x.shape
    out_dtype = x.dtype if out_dtype is None else out_dtype
    w1, b1, w2, b2 = kparams['w1'], kparams['b1'], kparams['w2'], kparams['b2']

    tn = _choose_tile(N, block_n)
    grid_n = pl.cdiv(N, tn)           # ragged last tile handled in-kernel (masked)

    # VMEM budget: resident weights/biases + double-buffered (tn, L) in/out.
    w_bytes = 2 * L * L * w1.dtype.itemsize + 2 * L * b1.dtype.itemsize
    act_bytes = 2 * tn * L * (x.dtype.itemsize + jnp.dtype(out_dtype).itemsize)
    vmem_limit = int(min(max(2 * (w_bytes + act_bytes), 8 << 20), 56 << 20))

    cost = pl.CostEstimate(
        flops=4 * N * L * L,          # two (N,L)x(L,L) matmuls
        transcendentals=0,
        bytes_accessed=int(N * L * (x.dtype.itemsize + jnp.dtype(out_dtype).itemsize)
                           + w_bytes),
    )

    out = pl.pallas_call(
        resblock_kernel,
        out_shape=jax.ShapeDtypeStruct((N, L), out_dtype),
        grid_spec=pltpu.PrefetchScalarGridSpec(
            num_scalar_prefetch=0,
            grid=(grid_n,),
            in_specs=[
                pl.BlockSpec((tn, L), lambda i: (i, 0)),   # x: streamed per tile
                pl.BlockSpec((L, L), lambda i: (0, 0)),    # w1: VMEM-resident
                pl.BlockSpec((1, L), lambda i: (0, 0)),    # b1: VMEM-resident
                pl.BlockSpec((L, L), lambda i: (0, 0)),    # w2: VMEM-resident
                pl.BlockSpec((1, L), lambda i: (0, 0)),    # b2: VMEM-resident
            ],
            out_specs=pl.BlockSpec((tn, L), lambda i: (i, 0)),
        ),
        compiler_params=pltpu.CompilerParams(
            dimension_semantics=("parallel",),             # megacore on v7x
            vmem_limit_bytes=vmem_limit,
        ),
        cost_estimate=cost,
    )(x, w1, b1, w2, b2)

    return out


# ---------------------------------------------------------------------------
# Pure-JAX reference mirroring the PyTorch ResBlock.forward (f32 throughout)
# ---------------------------------------------------------------------------
def reference_forward(params, x):
    relu = lambda a: jnp.maximum(a, 0.0)
    h = relu(x) @ params['w1'] + params['b1']
    h = relu(h) @ params['w2'] + params['b2']
    return x + h


if __name__ == "__main__":
    layer = 128
    key = jax.random.PRNGKey(0)
    kp, kx = jax.random.split(key)
    params = init_params(kp, layer)
    kparams = make_kernel_params(params)      # one-time bf16 weight cast

    # Check 1: tile divides batch, 8 grid steps (exercises pipeline/megacore).
    batch = 512
    x = jax.random.normal(kx, (batch, layer), jnp.float32)
    out = jax.block_until_ready(resblock_forward(kparams, x, block_n=64))
    assert out.shape == (batch, layer) and out.dtype == jnp.float32
    ref = reference_forward(params, x)
    if not jnp.allclose(out, ref, atol=2e-2, rtol=2e-2):
        err = float(jnp.max(jnp.abs(out - ref)))
        raise AssertionError(f"mismatch (divisible batch), max abs err {err}")

    # Check 2: ragged batch -> masked partial last tile, no pad/slice copies.
    batch2 = 200
    x2 = jax.random.normal(jax.random.PRNGKey(1), (batch2, layer), jnp.float32)
    out2 = jax.block_until_ready(resblock_forward(kparams, x2, block_n=64))
    assert out2.shape == (batch2, layer)
    ref2 = reference_forward(params, x2)
    if not jnp.allclose(out2, ref2, atol=2e-2, rtol=2e-2):
        err = float(jnp.max(jnp.abs(out2 - ref2)))
        raise AssertionError(f"mismatch (partial tile), max abs err {err}")

    print("KERNEL_OK")
</pallas_src>

<mosaic_0001>
module attributes {stable_mosaic.version = 11 : i64} {
  func.func @resblock_kernel(%arg0: i32, %arg1: memref<64x128xf32, #tpu.memory_space<vmem>>, %arg2: memref<128x128xbf16, #tpu.memory_space<vmem>>, %arg3: memref<1x128xf32, #tpu.memory_space<vmem>>, %arg4: memref<128x128xbf16, #tpu.memory_space<vmem>>, %arg5: memref<1x128xf32, #tpu.memory_space<vmem>>, %arg6: memref<64x128xf32, #tpu.memory_space<vmem>>) attributes {dimension_semantics = [#tpu.dimension_semantics<parallel>], iteration_bounds = array<i64: 8>, scalar_prefetch = 0 : i64, scratch_operands = 0 : i64, tpu.core_type = #tpu.core_type<tc>, window_params = [{transform_indices = @transform_0, window_bounds = array<i64: 64, 128>}, {pipeline_mode = #tpu.pipeline_mode<synchronous>, transform_indices = @transform_1, window_bounds = array<i64: 128, 128>}, {pipeline_mode = #tpu.pipeline_mode<synchronous>, transform_indices = @transform_2, window_bounds = array<i64: 1, 128>}, {pipeline_mode = #tpu.pipeline_mode<synchronous>, transform_indices = @transform_3, window_bounds = array<i64: 128, 128>}, {pipeline_mode = #tpu.pipeline_mode<synchronous>, transform_indices = @transform_4, window_bounds = array<i64: 1, 128>}, {transform_indices = @transform_5, window_bounds = array<i64: 64, 128>}]} {
    %c0 = arith.constant 0 : index
    %c0_0 = arith.constant 0 : index
    %0 = vector.load %arg1[%c0, %c0_0] : memref<64x128xf32, #tpu.memory_space<vmem>>, vector<64x128xf32>
    %cst = arith.constant 0.000000e+00 : f32
    %1 = vector.broadcast %cst : f32 to vector<64x128xf32>
    %2 = arith.maximumf %0, %1 : vector<64x128xf32>
    %3 = arith.truncf %2 : vector<64x128xf32> to vector<64x128xbf16>
    %c0_1 = arith.constant 0 : index
    %c0_2 = arith.constant 0 : index
    %4 = vector.load %arg2[%c0_1, %c0_2] : memref<128x128xbf16, #tpu.memory_space<vmem>>, vector<128x128xbf16>
    %cst_3 = arith.constant dense<0.000000e+00> : vector<64x128xf32>
    %5 = tpu.matmul %3, %4, %cst_3 {dimension_numbers = #tpu.dot_dimension_numbers<[1], [0], [0], [1], [0, 0, 1, 1], [], []>} : vector<64x128xbf16>, vector<128x128xbf16>, vector<64x128xf32> -> vector<64x128xf32>
    %c0_4 = arith.constant 0 : index
    %c0_5 = arith.constant 0 : index
    %6 = vector.load %arg3[%c0_4, %c0_5] : memref<1x128xf32, #tpu.memory_space<vmem>>, vector<1x128xf32>
    %7 = vector.broadcast %6 : vector<1x128xf32> to vector<64x128xf32>
    %8 = arith.addf %5, %7 : vector<64x128xf32>
    %cst_6 = arith.constant 0.000000e+00 : f32
    %9 = vector.broadcast %cst_6 : f32 to vector<64x128xf32>
    %10 = arith.maximumf %8, %9 : vector<64x128xf32>
    %11 = arith.truncf %10 : vector<64x128xf32> to vector<64x128xbf16>
    %c0_7 = arith.constant 0 : index
    %c0_8 = arith.constant 0 : index
    %12 = vector.load %arg4[%c0_7, %c0_8] : memref<128x128xbf16, #tpu.memory_space<vmem>>, vector<128x128xbf16>
    %cst_9 = arith.constant dense<0.000000e+00> : vector<64x128xf32>
    %13 = tpu.matmul %11, %12, %cst_9 {dimension_numbers = #tpu.dot_dimension_numbers<[1], [0], [0], [1], [0, 0, 1, 1], [], []>} : vector<64x128xbf16>, vector<128x128xbf16>, vector<64x128xf32> -> vector<64x128xf32>
    %c0_10 = arith.constant 0 : index
    %c0_11 = arith.constant 0 : index
    %14 = vector.load %arg5[%c0_10, %c0_11] : memref<1x128xf32, #tpu.memory_space<vmem>>, vector<1x128xf32>
    %15 = vector.broadcast %14 : vector<1x128xf32> to vector<64x128xf32>
    %16 = arith.addf %13, %15 : vector<64x128xf32>
    %17 = arith.addf %0, %16 : vector<64x128xf32>
    %c0_12 = arith.constant 0 : index
    %c0_13 = arith.constant 0 : index
    %18 = vector.load %arg6[%c0_12, %c0_13] : memref<64x128xf32, #tpu.memory_space<vmem>>, vector<64x128xf32>
    tpu.vector_store %arg6[%c0_12, %c0_13], %17 {strides = array<i32>} : memref<64x128xf32, #tpu.memory_space<vmem>>, vector<64x128xf32>,
    return
  }
  func.func @transform_0(%arg0: i32) -> (i32, i32) {
    %c0_i32 = arith.constant 0 : i32
    %c0_i32_0 = arith.constant 0 : i32
    return %arg0, %c0_i32 : i32, i32
  }
  func.func @transform_1(%arg0: i32) -> (i32, i32) {
    %c0_i32 = arith.constant 0 : i32
    %c0_i32_0 = arith.constant 0 : i32
    %c0_i32_1 = arith.constant 0 : i32
    return %c0_i32, %c0_i32_0 : i32, i32
  }
  func.func @transform_2(%arg0: i32) -> (i32, i32) {
    %c0_i32 = arith.constant 0 : i32
    %c0_i32_0 = arith.constant 0 : i32
    %c0_i32_1 = arith.constant 0 : i32
    return %c0_i32, %c0_i32_0 : i32, i32
  }
  func.func @transform_3(%arg0: i32) -> (i32, i32) {
    %c0_i32 = arith.constant 0 : i32
    %c0_i32_0 = arith.constant 0 : i32
    %c0_i32_1 = arith.constant 0 : i32
    return %c0_i32, %c0_i32_0 : i32, i32
  }
  func.func @transform_4(%arg0: i32) -> (i32, i32) {
    %c0_i32 = arith.constant 0 : i32
    %c0_i32_0 = arith.constant 0 : i32
    %c0_i32_1 = arith.constant 0 : i32
    return %c0_i32, %c0_i32_0 : i32, i32
  }
  func.func @transform_5(%arg0: i32) -> (i32, i32) {
    %c0_i32 = arith.constant 0 : i32
    %c0_i32_0 = arith.constant 0 : i32
    return %arg0, %c0_i32 : i32, i32
  }
}

</mosaic_0001>

<bundles_post_ra>
// kernel: tpu_custom_call.1
= control target key start
LH: loop header
LB: loop body
LE: loop exit
PB: predicated region body
PF: predicated region fallthrough
CT: control target
= control target key end

     0   :  { %10 = vsyncpa [#allocation3], 0  ;;  %s1375_s0 = inlined_call_operand.hbm [shape: f32[512,128], index: 0, kind: input, shape index: {}]   ;;  %s1376_s1 = inlined_call_operand.hbm [shape: bf16[128,128], index: 1, kind: input, shape index: {}]   ;;  %s1377_s2 = inlined_call_operand.vmem [shape: f32[1,128], index: 2, kind: input, shape index: {}]   ;;  %s1378_s3 = inlined_call_operand.hbm [shape: bf16[128,128], index: 3, kind: input, shape index: {}]   ;;  %s1379_s4 = inlined_call_operand.vmem [shape: f32[1,128], index: 4, kind: input, shape index: {}]   ;;  %s1380_s5 = inlined_call_operand.hbm [shape: f32[512,128], index: 5, kind: output, shape index: {}]  }
   0x1   :  { %12 = vsyncpa [#allocation3 + $0x1], 0 }
   0x2   :  { %13 = vsyncpa [#allocation6], 0 }
   0x3   :  { %14 = vsyncpa [#allocation4], 0 }
   0x4   :  { %16 = vsyncpa [#allocation4 + $0x1], 0  ;;  %s1098_s18 = smov 0   ;;  %s1100_s19 = smov 0  }
   0x5   :  { %s1102_s20 = smov 0   ;;  %s1104_s21 = smov 0  }
   0x6 LB: > { %s1119_s22 = sadd.s32 4294967295, %s1056_s21   ;;  %s701_s23 = sadd.s32 4294967294, %s1056_s21   ;;  %s1056_s21 = sphi %s1104_s21, %s1399_s21   ;;  %s1052_s20 = sphi %s1102_s20, %s1398_s20   ;;  %s1048_s19 = sphi %s1100_s19, %s1397_s19   ;;  %s1044_s18 = sphi %s1098_s18, %s1396_s18  }
   0x7   : > { %p42_p0 = scmp.ne.s32.totalorder %s1048_s19, %s1044_s18  ;;  %p1381_p1 = scmp.eq.s32.totalorder %s1119_s22, 0 }
   0x8   : > { %p156_p3 = scmp.eq.s32.totalorder %s701_s23, 7  ;;  %p702_p5 = scmp.ge.s32.totalorder %s1056_s21, 1 }
   0x9   : > { %p1128_p4 = por %p1381_p1, %p42_p0  ;;  %p163_p7 = scmp.lt.s32.totalorder %s1056_s21, 9 }
   0xa   : > { %p1133_p6 = por %p156_p3, %p42_p0  ;;  %s1058_s27 = smov [#allocation5]  }
   0xb   : > { %s1384_s24 = scalar_select %p1128_p4, 1, 0 }
   0xc   : > { %s1385_s25 = scalar_select %p1133_p6, 1, 0 }
   0xd   : > { %p1138_p8 = pnand %p702_p5, %p163_p7  ;;  %s175_s28 = sshll.u32 %s1058_s27, 4  ;;  %s176_s28 = int_to_ptr.vmem [resolvable:$true] %s175_s28 }
   0xe   : > { %s1059_s30 = smov [#allocation7]   ;;  %s900_s9 = scalar_lea.hbm %s1376_s1, 1024 }
   0xf   : > { %s1386_s26 = scalar_select %p1138_p8, 1, 0 }
  0x10   : > { %p823_p9 = pneg %p1138_p8  ;;  %s191_s6 = sshll.u32 %s1059_s30, 4  ;;  %s1150_s6 = int_to_ptr.vmem [resolvable:$true] %s191_s6 }
  0x11   : > { %p901_p11 = scmp.ne.s32.totalorder %s1376_s1, %s900_s9  ;;  %p907_p3 = scmp.lt.u32.totalorder %s900_s9, %s1376_s1 }
  0x12   : > { %p1146_p10 = pnand %p823_p9, %p1381_p1 }
  0x14   : > { %p902_p12 = pneg %p1146_p10 }
  0x16   : > { %p903_p13 = pnand %p902_p12, %p901_p11 }
  0x18   : > { %p904_p0 = pneg %p903_p13 }
  0x1a   : > { %p909_p5 = pnand %p907_p3, %p904_p0 }
  0x1c   : > { %912 = shalt.err (!%p909_p5)
}
  0x1d   : > { %s913_s14 = scalar_lea.vmem %s176_s28, 1024  ;;  %p921_p2 = scmp.lt.s32.totalorder %s176_s28, %s176_s28 }
  0x1e   : > { %p914_p7 = scmp.ne.s32.totalorder %s176_s28, %s913_s14  ;;  %p922_p6 = scmp.lt.s32.totalorder %s913_s14, %s913_s14 }
  0x20   : > { %p916_p9 = pnand %p914_p7, %p902_p12  ;;  %p923_p4 = por %p922_p6, %p921_p2 }
  0x22   : > { %p917_p1 = pneg %p916_p9 }
  0x24   : > { %p924_p8 = pnand %p923_p4, %p917_p1 }
  0x26   : > { %927 = shalt.err (!%p924_p8)
}
  0x27   : > { %s1060_s15 = smov 64   ;;  %s1061_s16 = smov 4  }
  0x28   : > { %826 = dma.hbm_to_vmem [thread:$0]  (!%p1146_p10), %s1376_s1, 1024, %s176_s28, [#allocation6], %s1060_s15, %s1060_s15, %s1061_s16  }
  0x29   : > { %s928_s7 = scalar_lea.hbm %s1378_s3, 1024 }
  0x2a   : > { %p929_p11 = scmp.ne.s32.totalorder %s1378_s3, %s928_s7  ;;  %p935_p4 = scmp.lt.u32.totalorder %s928_s7, %s1378_s3 }
  0x2c   : > { %p931_p1 = pnand %p929_p11, %p902_p12 }
  0x2e   : > { %p932_p2 = pneg %p931_p1 }
  0x30   : > { %p937_p6 = pnand %p935_p4, %p932_p2 }
  0x32   : > { %940 = shalt.err (!%p937_p6)
}
  0x33   : > { %s941_s28 = scalar_lea.vmem %s1150_s6, 1024  ;;  %p949_p3 = scmp.lt.s32.totalorder %s1150_s6, %s1150_s6 }
  0x34   : > { %p942_p8 = scmp.ne.s32.totalorder %s1150_s6, %s941_s28  ;;  %p950_p5 = scmp.lt.s32.totalorder %s941_s28, %s941_s28 }
  0x36   : > { %p944_p13 = pnand %p942_p8, %p902_p12  ;;  %p951_p7 = por %p950_p5, %p949_p3 }
  0x38   : > { %p945_p0 = pneg %p944_p13 }
  0x3a   : > { %p952_p9 = pnand %p951_p7, %p945_p0 }
  0x3c   : > { %955 = shalt.err (!%p952_p9)
}
  0x3d   : > { %829 = dma.hbm_to_vmem [thread:$0]  (!%p1146_p10), %s1378_s3, 1024, %s1150_s6, [#allocation6], %s1060_s15, %s1060_s15, %s1061_s16  }
  0x3e   : > { %s1200_s14 = sadd.s32 1, %s1056_s21   ;;  %s29_s29 = sadd.s32 1, %s1052_s20 }
  0x3f   : > { %s26_s17 = ssub.s32 %s1056_s21, %s1200_s14  ;;  %p36_p12 = scmp.ne.s32.totalorder %s1052_s20, %s1048_s19 }
  0x40   : > { %p27_p11 = scmp.eq.s32.totalorder %s26_s17, 0  ;;  %p37_p1 = scmp.eq.s32.totalorder %s1056_s21, 0 }
  0x41   : > { %p1388_p2 = scmp.eq.s32.totalorder %s1119_s22, 7  ;;  %p840_p6 = scmp.lt.s32.totalorder %s1056_s21, 8 }
  0x42   : > { %s1216_s27 = scalar_select %p27_p11, %s1052_s20, %s29_s29  }
  0x43   : > { %p1210_p4 = por %p1388_p2, %p36_p12  ;;  %p38_p8 = por %p37_p1, %p36_p12 }
  0x44   : > { %s208_s30 = sand.u32 1, %s1052_s20   ;;  %s737_s6 = sshll.u32 %s1056_s21, 10 }
  0x45   : > { %s706_s7 = sshll.u32 %s208_s30, 6  ;;  %s1223_s8 = scalar_lea.hbm %s1375_s0, %s737_s6 }
  0x46   : > { %s212_s9 = scalar_lea.vmem [#allocation2], %s706_s7  ;;  %p1227_p10 = pnand %p840_p6, %p38_p8 }
  0x47   : > { %s219_s10 = sshll.u32 %s212_s9, 4  ;;  %s1231_s28 = scalar_lea.sflag [#allocation3], %s208_s30  ;;  %s1225_s10 = int_to_ptr.vmem [resolvable:$true] %s219_s10 }
  0x48   : > { %s956_s12 = scalar_lea.hbm %s1223_s8, 1024  ;;  %p958_p0 = pneg %p1227_p10 }
  0x49   : > { %p957_p13 = scmp.ne.s32.totalorder %s1223_s8, %s956_s12  ;;  %s961_s17 = scalar_lea.hbm %s1375_s0, 8192 }
  0x4a   : > { %p962_p7 = scmp.lt.u32.totalorder %s1223_s8, %s1375_s0  ;;  %p963_p9 = scmp.lt.u32.totalorder %s961_s17, %s956_s12 }
  0x4b   : > { %p959_p3 = pnand %p958_p0, %p957_p13  ;;  %p965_p11 = scmp.lt.u32.totalorder %s956_s12, %s1223_s8 }
  0x4c   : > { %p964_p12 = por %p963_p9, %p962_p7 }
  0x4d   : > { %p960_p5 = pneg %p959_p3 }
  0x4e   : > { %p966_p1 = por %p965_p11, %p964_p12 }
  0x50   : > { %p967_p2 = pnand %p966_p1, %p960_p5 }
  0x52   : > { %970 = shalt.err (!%p967_p2)
}
  0x53   : > { %s971_s30 = scalar_lea.vmem %s1225_s10, 1024  ;;  %s1062_s15 = smov [#allocation2]  }
  0x54   : > { %p972_p6 = scmp.ne.s32.totalorder %s1225_s10, %s971_s30  ;;  %s976_s16 = sshll.u32 %s1062_s15, 4  ;;  %s977_s16 = int_to_ptr.vmem [resolvable:$false] %s976_s16 }
  0x55   : > { %s978_s9 = scalar_lea.vmem %s977_s16, 2048  ;;  %p979_p3 = scmp.lt.s32.totalorder %s1225_s10, %s977_s16 }
  0x56   : > { %p974_p8 = pnand %p972_p6, %p958_p0  ;;  %p980_p7 = scmp.lt.s32.totalorder %s978_s9, %s971_s30 }
  0x58   : > { %p975_p13 = pneg %p974_p8  ;;  %p981_p9 = por %p980_p7, %p979_p3 }
  0x5a   : > { %p982_p12 = pnand %p981_p9, %p975_p13 }
  0x5c   : > { %985 = shalt.err (!%p982_p12)
}
  0x5d   : > { %s1063_s12 = smov 128   ;;  %s1064_s13 = smov 8  }
  0x5e   : > { %833 = dma.hbm_to_vmem [thread:$0]  (!%p1227_p10), %s1223_s8, 1024, %s1225_s10, %s1231_s28, %s1063_s12, %s1063_s12, %s1064_s13  }
  0x5f   : > { %p1391_p0 = scmp.ne.s32.totalorder %s1386_s26, 0 }
  0x60   : > { %s1262_s29 = sand.u32 (!%p1391_p0), 1, %s1048_s19   ;;  %p1392_p5 = scmp.ne.s32.totalorder (!%p1391_p0), %s1384_s24, 0 }
  0x61   : > { %231 = sbr.rel (%p1391_p0) target bundleno = 605 (0x25d), region = 40  ;;  %s710_s17 = sshll.u32 (!%p1391_p0), %s1262_s29, 6 }
  0x62   : > { %s234_s7 = scalar_lea.sflag (!%p1391_p0), [#allocation3], %s1262_s29  ;;  %s1268_s6 = scalar_lea.vmem (!%p1391_p0), [#allocation2], %s710_s17 }
  0x68   : > { %1031 = dma.done.wait (%p1392_p5), %s234_s7, 1024  }
  0x69   : > { %1033 = vsyncadd (%p1392_p5), %s234_s7, 4294966272  ;;  %p1393_p10 = scmp.eq.s32.totalorder %s1119_s22, 0 }
  0x6b   : > { %1035 = dma.done.wait (%p1393_p10), [#allocation6], 2048   ;;  %p1394_p11 = pmov %p1393_p10 }
  0x6c   : > { %v884_v0 = vld [vmem:[#allocation5] sm:$0xff]   ;;  %v885_v1 = vld [vmem:[#allocation5 + $0x8] sm:$0xff]   ;;  %v886_v2 = vld [vmem:[#allocation5 + $0x10] sm:$0xff]   ;;  %s271_s11 = scalar_lea.vmem [#allocation8], %s710_s17  ;;  %s738_s30 = sshll.u32 %s1119_s22, 10 }
  0x6d   : > { %1037 = vsyncadd (%p1394_p11), [#allocation6], 4294965248  ;;  %763 = vmatprep.subr.bf16.mxu0 %v884_v0  ;;  %v887_v3 = vld [vmem:[#allocation5 + $0x18] sm:$0xff]   ;;  %v1279_v4 = vld [vmem:[%s1268_s6] sm:$0xff]  ;;  %s609_s28 = sshll.u32 %s271_s11, 4  ;;  %s1331_s22 = scalar_lea.hbm %s1380_s5, %s738_s30  ;;  %s1324_s28 = int_to_ptr.vmem [resolvable:$true] %s609_s28 }
  0x6e   : > { %764 = vmatpush3.bf16.msra.mxu0 %v884_v0  ;;  %v1282_v5 = vld [vmem:[%s1268_s6 + $0x8] sm:$0xff]  ;;  %v283_v6 = vmax.f32 %v1279_v4, 0.0  ;;  %v892_v8 = vld [vmem:[#allocation7] sm:$0xff]   ;;  %v894_v12 = vld [vmem:[#allocation7 + $0x10] sm:$0xff]   ;;  %s596_s9 = scalar_lea.sflag [#allocation4], %s1262_s29  ;;  %s986_s12 = scalar_lea.vmem %s1324_s28, 1024 }
  0x6f   : > { %765 = vmatprep.subr.bf16.mxu0 %v885_v1  ;;  %v284_v7 = vmax.f32 %v1282_v5, 0.0  ;;  %v888_v9 = vld [vmem:[#allocation5 + $0x20] sm:$0xff]   ;;  %787 = vmatprep.subr.bf16.mxu1 %v892_v8  ;;  %v893_v11 = vld [vmem:[#allocation7 + $0x8] sm:$0xff]   ;;  %v895_v14 = vld [vmem:[#allocation7 + $0x18] sm:$0xff]   ;;  %p987_p1 = scmp.ne.s32.totalorder %s1324_s28, %s986_s12  ;;  %s1065_s13 = smov [#allocation8]  }
  0x70   : > { %788 = vmatpush3.bf16.msra.mxu1 %v892_v8  ;;  %v889_v13 = vld [vmem:[#allocation5 + $0x28] sm:$0xff]   ;;  %v890_v15 = vld [vmem:[#allocation5 + $0x30] sm:$0xff]   ;;  %v896_v16 = vld [vmem:[#allocation7 + $0x20] sm:$0xff]   ;;  %s990_s17 = sshll.u32 %s1065_s13, 4  ;;  %s991_s17 = int_to_ptr.vmem [resolvable:$false] %s990_s17 }
  0x71   : > { %v291_v10 = vpack.c.bf16 %v284_v7, %v283_v6  ;;  %789 = vmatprep.subr.bf16.mxu1 %v893_v11  ;;  %v1287_v17 = vld [vmem:[%s1268_s6 + $0x10] sm:$0xff]  ;;  %v1290_v18 = vld [vmem:[%s1268_s6 + $0x18] sm:$0xff]  ;;  %v1293_v20 = vld [vmem:[%s1268_s6 + $0x20] sm:$0xff]  ;;  %p988_p2 = pnand %p987_p1, %p1210_p4  ;;  %s992_s7 = scalar_lea.vmem %s991_s17, 2048 }
  0x72   : > { %766 = vmatpush3.bf16.msra.mxu0 %v885_v1  ;;  %v891_v19 = vld [vmem:[#allocation5 + $0x38] sm:$0xff]   ;;  %v1296_v21 = vld [vmem:[%s1268_s6 + $0x28] sm:$0xff]  ;;  %v285_v22 = vmax.f32 %v1287_v17, 0.0  ;;  %v286_v23 = vmax.f32 %v1290_v18, 0.0  ;;  %v287_v25 = vmax.f32 %v1293_v20, 0.0  ;;  %v1303_v29 = vld [vmem:[%s1268_s6 + $0x30] sm:$0xff]  ;;  %p993_p8 = scmp.lt.s32.totalorder %s1324_s28, %s991_s17  ;;  %p994_p13 = scmp.lt.s32.totalorder %s992_s7, %s986_s12 }
  0x73   : > { %767 = vmatprep.subr.bf16.mxu0 %v886_v2  ;;  %779 = vmatprep.mubr.bf16.mxu0 %v291_v10  ;;  %v897_v24 = vld [vmem:[#allocation7 + $0x28] sm:$0xff]   ;;  %v288_v26 = vmax.f32 %v1296_v21, 0.0  ;;  %v1306_v30 = vld [vmem:[%s1268_s6 + $0x38] sm:$0xff]  ;;  %v289_v31 = vmax.f32 %v1303_v29, 0.0  ;;  %v898_v34 = vld [vmem:[#allocation7 + $0x30] sm:$0xff]   ;;  %p989_p6 = pneg %p988_p2 }
  0x74   : > { %790 = vmatpush3.bf16.msra.mxu1 %v893_v11  ;;  %v292_v27 = vpack.c.bf16 %v286_v23, %v285_v22  ;;  %v290_v32 = vmax.f32 %v1306_v30, 0.0  ;;  %v899_v35 = vld [vmem:[#allocation7 + $0x38] sm:$0xff]   ;;  %v714_v36 = vld [vmem:[%s1377_s2] ss:$0 sm:$0xff]  ;;  %p995_p3 = por %p994_p13, %p993_p8 }
  0x75   : > { %791 = vmatprep.subr.bf16.mxu1 %v894_v12  ;;  %v293_v28 = vpack.c.bf16 %v288_v26, %v287_v25  ;;  %v723_v1 = vld [vmem:[%s1379_s4] ss:$0 sm:$0xff] }
  0x76   : > { %768 = vmatpush3.bf16.msra.mxu0 %v886_v2  ;;  %v294_v33 = vpack.c.bf16 %v290_v32, %v289_v31  ;;  %p996_p7 = pnand %p995_p3, %p989_p6 }
  0x77   : > { %769 = vmatprep.subr.bf16.mxu0 %v887_v3 }
  0x78   : > { %792 = vmatpush3.bf16.msra.mxu1 %v894_v12 }
  0x79   : > { %793 = vmatprep.subr.bf16.mxu1 %v895_v14 }
  0x7a   : > { %770 = vmatpush3.bf16.msra.mxu0 %v887_v3 }
  0x7b   : > { %771 = vmatprep.subr.bf16.mxu0 %v888_v9 }
  0x7c   : > { %794 = vmatpush3.bf16.msra.mxu1 %v895_v14 }
  0x7d   : > { %795 = vmatprep.subr.bf16.mxu1 %v896_v16 }
  0x7e   : > { %772 = vmatpush3.bf16.msra.mxu0 %v888_v9 }
  0x7f   : > { %773 = vmatprep.subr.bf16.mxu0 %v889_v13 }
  0x80   : > { %796 = vmatpush3.bf16.msra.mxu1 %v896_v16 }
  0x81   : > { %797 = vmatprep.subr.bf16.mxu1 %v897_v24 }
  0x82   : > { %774 = vmatpush3.bf16.msra.mxu0 %v889_v13 }
  0x83   : > { %775 = vmatprep.subr.bf16.mxu0 %v890_v15 }
  0x84   : > { %798 = vmatpush3.bf16.msra.mxu1 %v897_v24 }
  0x85   : > { %799 = vmatprep.subr.bf16.mxu1 %v898_v34 }
  0x86   : > { %776 = vmatpush3.bf16.msra.mxu0 %v890_v15 }
  0x87   : > { %777 = vmatprep.subr.bf16.mxu0 %v891_v19 }
  0x88   : > { %800 = vmatpush3.bf16.msra.mxu1 %v898_v34 }
  0x89   : > { %801 = vmatprep.subr.bf16.mxu1 %v899_v35 }
  0x8a   : > { %778 = vmatpush3.bf16.msra.mxu0 %v891_v19 }
  0x8c   : > { %802 = vmatpush3.bf16.msra.mxu1 %v899_v35 }
  0x8d   : > { %780 = vmatmul.mubr.bf16.vlgmr.msra.gmra.mrb[0].mxu0 %v292_v27 }
  0x8e   : > { %783 = vmatprep.mubr.bf16.mxu0 %v293_v28 }
  0x95   : > { %784 = vmatmul.mubr.bf16.gmra.mrb[4].mxu0 %v294_v33 }
 0x160   : > { %v781_v37 = vpop.f32.mrb[0].mxu0 }
 0x161   : > { %v409_v38 = vadd.f32 %v781_v37, %v714_v36  ;;  %v400_v39 = vpop.f32.mrb[1].mxu0 }
 0x162   : > { %v401_v40 = vadd.f32 %v714_v36, %v400_v39  ;;  %v782_v41 = vpop.f32.mrb[2].mxu0 }
 0x163   : > { %v412_v42 = vadd.f32 %v782_v41, %v714_v36  ;;  %v403_v43 = vpop.f32.mrb[3].mxu0  ;;  %v433_v45 = vmax.f32 %v409_v38, 0.0 }
 0x164   : > { %v404_v44 = vadd.f32 %v714_v36, %v403_v43  ;;  %v431_v47 = vmax.f32 %v401_v40, 0.0 }
 0x165   : > { %v434_v46 = vmax.f32 %v412_v42, 0.0 }
 0x166   : > { %v432_v48 = vmax.f32 %v404_v44, 0.0 }
 0x167   : > { %v440_v49 = vpack.c.bf16 %v434_v46, %v433_v45 }
 0x168   : > { %v785_v50 = vpop.f32.mrb[4].mxu0  ;;  %v439_v51 = vpack.c.bf16 %v432_v48, %v431_v47 }
 0x169   : > { %v425_v52 = vadd.f32 %v785_v50, %v714_v36  ;;  %v416_v53 = vpop.f32.mrb[5].mxu0 }
 0x16a   : > { %v417_v54 = vadd.f32 %v714_v36, %v416_v53  ;;  %v786_v55 = vpop.f32.mrb[6].mxu0  ;;  %803 = vmatprep.mubr.bf16.mxu1 %v439_v51 }
 0x16b   : > { %v428_v56 = vadd.f32 %v786_v55, %v714_v36  ;;  %v419_v57 = vpop.f32.mrb[7].mxu0  ;;  %804 = vmatmul.mubr.bf16.vlgmr.msra.gmra.mrb[0].mxu1 %v440_v49  ;;  %v437_v59 = vmax.f32 %v425_v52, 0.0 }
 0x16c   : > { %v420_v58 = vadd.f32 %v714_v36, %v419_v57  ;;  %v435_v61 = vmax.f32 %v417_v54, 0.0 }
 0x16d   : > { %v438_v60 = vmax.f32 %v428_v56, 0.0 }
 0x16e   : > { %v436_v62 = vmax.f32 %v420_v58, 0.0 }
 0x16f   : > { %v442_v63 = vpack.c.bf16 %v438_v60, %v437_v59 }
 0x170   : > { %v441_v0 = vpack.c.bf16 %v436_v62, %v435_v61 }
 0x172   : > { %807 = vmatprep.mubr.bf16.mxu1 %v441_v0 }
 0x173   : > { %808 = vmatmul.mubr.bf16.gmra.mrb[4].mxu1 %v442_v63 }
 0x23e   : > { %v805_v2 = vpop.f32.mrb[0].mxu1 }
 0x23f   : > { %v557_v3 = vadd.f32 %v805_v2, %v723_v1  ;;  %v548_v6 = vpop.f32.mrb[1].mxu1 }
 0x240   : > { %v549_v7 = vadd.f32 %v723_v1, %v548_v6  ;;  %v806_v8 = vpop.f32.mrb[2].mxu1 }
 0x241   : > { %v581_v9 = vadd.f32 %v557_v3, %v1287_v17  ;;  %v560_v10 = vadd.f32 %v806_v8, %v723_v1  ;;  %v551_v11 = vpop.f32.mrb[3].mxu1 }
 0x242   : > { %v579_v12 = vadd.f32 %v549_v7, %v1279_v4  ;;  %v552_v13 = vadd.f32 %v723_v1, %v551_v11 }
 0x243   : > { %589 = vst [vmem:[%s271_s11 + $0x10] sm:$0xff] %v581_v9  ;;  %v582_v14 = vadd.f32 %v560_v10, %v1290_v18 }
 0x244   : > { %587 = vst [vmem:[%s271_s11] sm:$0xff] %v579_v12  ;;  %v580_v15 = vadd.f32 %v552_v13, %v1282_v5 }
 0x245   : > { %590 = vst [vmem:[%s271_s11 + $0x18] sm:$0xff] %v582_v14 }
 0x246   : > { %588 = vst [vmem:[%s271_s11 + $0x8] sm:$0xff] %v580_v15  ;;  %v809_v16 = vpop.f32.mrb[4].mxu1 }
 0x247   : > { %v573_v19 = vadd.f32 %v809_v16, %v723_v1  ;;  %v564_v17 = vpop.f32.mrb[5].mxu1 }
 0x248   : > { %v565_v22 = vadd.f32 %v723_v1, %v564_v17  ;;  %v810_v23 = vpop.f32.mrb[6].mxu1 }
 0x249   : > { %v585_v4 = vadd.f32 %v573_v19, %v1303_v29  ;;  %v576_v24 = vadd.f32 %v810_v23, %v723_v1  ;;  %v567_v25 = vpop.f32.mrb[7].mxu1 }
 0x24a   : > { %v583_v5 = vadd.f32 %v565_v22, %v1293_v20  ;;  %v568_v18 = vadd.f32 %v723_v1, %v567_v25 }
 0x24b   : > { %593 = vst [vmem:[%s271_s11 + $0x30] sm:$0xff] %v585_v4  ;;  %v586_v26 = vadd.f32 %v576_v24, %v1306_v30 }
 0x24c   : > { %591 = vst [vmem:[%s271_s11 + $0x20] sm:$0xff] %v583_v5  ;;  %v584_v27 = vadd.f32 %v568_v18, %v1296_v21 }
 0x24d   : > { %594 = vst [vmem:[%s271_s11 + $0x38] sm:$0xff] %v586_v26 }
 0x24e   : > { %592 = vst [vmem:[%s271_s11 + $0x28] sm:$0xff] %v584_v27 }
 0x24f   : > { %999 = shalt.err (!%p996_p7)
}
 0x250   : > { %s1000_s6 = scalar_lea.hbm %s1331_s22, 1024  ;;  %s1004_s8 = scalar_lea.hbm %s1380_s5, 8192 }
 0x251   : > { %p1001_p9 = scmp.ne.s32.totalorder %s1331_s22, %s1000_s6  ;;  %p1005_p5 = scmp.lt.u32.totalorder %s1331_s22, %s1380_s5 }
 0x252   : > { %p1006_p10 = scmp.lt.u32.totalorder %s1004_s8, %s1000_s6  ;;  %p1008_p1 = scmp.lt.u32.totalorder %s1000_s6, %s1331_s22 }
 0x253   : > { %p1002_p12 = pnand %p1001_p9, %p1210_p4 }
 0x254   : > { %p1007_p11 = por %p1006_p10, %p1005_p5 }
 0x255   : > { %p1003_p0 = pneg %p1002_p12 }
 0x256   : > { %p1009_p2 = por %p1008_p1, %p1007_p11 }
 0x258   : > { %p1010_p6 = pnand %p1009_p2, %p1003_p0 }
 0x25a   : > { %1013 = shalt.err (!%p1010_p6)
}
 0x25b   : > { %s1066_s30 = smov 128   ;;  %s1067_s15 = smov 8  }
 0x25c   : > { %821 = dma.vmem_to_hbm [thread:$0]  (%p1210_p4), %s1324_s28, 1024, %s1331_s22, %s596_s9, %s1066_s30, %s1066_s30, %s1067_s15  }
 0x25d PF: > { %p843_p8 = scmp.ge.s32.totalorder %s1056_s21, 2  ;;  %s624_s16 = sand.u32 1, %s1044_s18  }
 0x25e   : > { %p1395_p13 = scmp.ne.s32.totalorder %s1385_s25, 0  ;;  %s625_s12 = scalar_lea.sflag [#allocation4], %s624_s16 }
 0x260   : > { %p835_p3 = pnand %p843_p8, %p1395_p13 }
 0x262   : > { %1039 = dma.done.wait (!%p835_p3), %s625_s12, 1024  }
 0x263   : > { %1041 = vsyncadd (!%p835_p3), %s625_s12, 4294966272  ;;  %p19_p7 = scmp.ge.s32.totalorder %s1200_s14, 10   ;;  %s1396_s18 = smov %s1048_s19 }
 0x264   : > { %s1397_s19 = smov %s1052_s20  ;;  %s1398_s20 = smov %s1216_s27 }
 0x265   : > { %s1399_s21 = smov %s1200_s14  ;;  %21 = sbr.rel (!%p19_p7) target bundleno = 6 (0x6), region = 93 }
 0x26c   :  { %630 = vsyncpa [#allocation3], 1 }
 0x26d   :  { %632 = vsyncpa [#allocation3 + $0x1], 1 }
 0x26e   :  { %633 = vsyncpa [#allocation6], 1 }
 0x26f   :  { %634 = vsyncpa [#allocation4], 1 }
 0x270   :  { %636 = vsyncpa [#allocation4 + $0x1], 1 }

</bundles_post_ra>
